<compile_context>
chip_gen: v5e
topology: v5e:2x2
jax: 0.10.0
libtpu: 0.0.40
codegen_flags: <defaults>
</compile_context>

<pallas_src>
import numpy as np
import jax
import jax.numpy as jnp
from jax import lax
from jax.experimental import pallas as pl
from jax.experimental.pallas import tpu as pltpu

# ---- module constants (from __init__) ----
NUM_BASIS = 30
PAD_BASIS = 32                     # basis rows padded 30 -> 32; row 30 = bias row
NODES = 5
X_START = 0.9
X_END = 3.0
SIGMA = (X_END - X_START) / NUM_BASIS
GAUSS_COEF = 1.0 / (SIGMA * np.sqrt(2.0 * np.pi))
INV_TWO_SIGMA2 = 0.5 / (SIGMA * SIGMA)
INV_SQRT2 = 1.0 / np.sqrt(2.0)
MU_STEP = (X_END - X_START) / (NUM_BASIS - 1)   # torch.linspace step (endpoints incl.)

# ---- packed-parameter layout ----
_LAYER_DIMS = [(NUM_BASIS, NODES)] + [(NODES, NODES)] * 5 + [(NODES, 1)]
_NUM_LAYERS = len(_LAYER_DIMS)     # 7
P_ROWS = 8 * _NUM_LAYERS           # 56 (multiple of 8)
P_COLS = 128                       # lane-aligned


def _gelu_exact(x):
    # PyTorch nn.GELU() default: exact erf-based GELU.
    return 0.5 * x * (1.0 + lax.erf(x * INV_SQRT2))


def _nn_kernel(x_ref, p_ref, o_ref):
    # x_ref: [1, TB] (batch on lanes), p_ref: [56, 128], o_ref: [1, TB]
    x = x_ref[...]                                                   # [1, TB]
    tb = x.shape[1]

    # Gaussian basis, padded to 32 rows (mu = linspace baked in via iota; minor cost).
    ridx32 = lax.broadcasted_iota(jnp.int32, (PAD_BASIS, tb), 0)     # sublane index
    mu = X_START + ridx32.astype(jnp.float32) * MU_STEP              # [32, TB]
    diff = x - mu                                                    # [32, TB]
    g = jnp.exp(-INV_TWO_SIGMA2 * diff * diff)                       # coef folded into W0
    ones_row30 = (ridx32 == NUM_BASIS).astype(jnp.float32)           # row 30 -> 1
    h = jnp.where(ridx32 < NUM_BASIS, g, ones_row30)                 # [32, TB]

    # Hoisted constant: row 5 == 1 (bias row restore for layers 1..6).
    ridx8 = lax.broadcasted_iota(jnp.int32, (8, tb), 0)
    bias_row = (ridx8 == NODES).astype(jnp.float32)                  # [8, TB]

    # Layer 0: aligned [8,32] @ [32,TB]; bias lives in W^T column 30.
    w0 = p_ref[0:8, 0:PAD_BASIS]
    z = jnp.dot(w0, h, preferred_element_type=jnp.float32)           # [8, TB]
    h = _gelu_exact(z) + bias_row                                    # row 5 -> 1 exactly

    # Layers 1..5: aligned [8,8] @ [8,TB]; bias lives in W^T column 5.
    for l in range(1, _NUM_LAYERS - 1):
        r0 = 8 * l
        w = p_ref[r0:r0 + 8, 0:8]
        z = jnp.dot(w, h, preferred_element_type=jnp.float32)        # [8, TB]
        h = _gelu_exact(z) + bias_row

    # Output layer (no activation): prediction is row 0.
    w = p_ref[8 * (_NUM_LAYERS - 1):8 * _NUM_LAYERS, 0:8]
    z = jnp.dot(w, h, preferred_element_type=jnp.float32)            # [8, TB]
    o_ref[...] = z[0:1, :]                                           # [1, TB] lane-dense


def _pack_params(params):
    """Pack [(w [in,out], b [1,out])] into one (8,128)-aligned [56,128] f32 block.

    Layer 0 weights are pre-scaled by GAUSS_COEF; biases occupy the W^T column that
    lines up with the kernel's constant ones row (col 30 for layer 0, col 5 after).
    Padded rows/cols stay exactly zero (required so padded basis/activation rows
    never contaminate real outputs)."""
    packed = jnp.zeros((P_ROWS, P_COLS), jnp.float32)

    w0, b0 = params[0]                                               # [30,5], [1,5]
    packed = packed.at[0:NODES, 0:NUM_BASIS].set(GAUSS_COEF * w0.T)
    packed = packed.at[0:NODES, NUM_BASIS].set(b0[0])                # bias col 30

    for l in range(1, _NUM_LAYERS):
        w, b = params[l]                                             # [5,n_out], [1,n_out]
        n_in, n_out = w.shape
        r0 = 8 * l
        packed = packed.at[r0:r0 + n_out, 0:n_in].set(w.T)
        packed = packed.at[r0:r0 + n_out, NODES].set(b[0])           # bias col 5
    return packed


def neural_network_forward(x, params, *, batch_tile=2048):
    """x: [B, 1] f32 (PyTorch layout). Returns [B, 1] f32."""
    B = x.shape[0]

    # Lane tiling: multiples of 128; wide tiles amortize grid-step overhead, but
    # keep >= 2 grid steps when the batch allows it (v7x megacore sharding).
    lane_blocks = -(-B // 128)                       # total 128-wide lane blocks
    tile_blocks = max(1, min(batch_tile // 128, lane_blocks))
    if lane_blocks >= 2 and tile_blocks >= lane_blocks:
        tile_blocks = (lane_blocks + 1) // 2
    tb = 128 * tile_blocks
    n_tiles = -(-lane_blocks // tile_blocks)
    bp = n_tiles * tb

    # Lane-dense input [1, Bp] (padded samples stay finite and are sliced away).
    x_lane = jnp.zeros((1, bp), jnp.float32).at[0, :B].set(x[:, 0])
    p = _pack_params(params)

    cost = pl.CostEstimate(
        flops=2 * 280 * bp,                          # 30*5 + 5*5*5 + 5 MACs per sample
        transcendentals=60 * bp,                     # 30 exp + 30 erf per sample
        bytes_accessed=8 * bp + P_ROWS * P_COLS * 4, # in + out + resident params
    )

    out_lane = pl.pallas_call(
        _nn_kernel,
        out_shape=jax.ShapeDtypeStruct((1, bp), jnp.float32),
        grid=(n_tiles,),
        in_specs=[
            pl.BlockSpec((1, tb), lambda i: (0, i)),            # batch tile (pipelined)
            pl.BlockSpec((P_ROWS, P_COLS), lambda i: (0, 0)),   # params stay resident
        ],
        out_specs=pl.BlockSpec((1, tb), lambda i: (0, i)),      # lane-dense output
        compiler_params=pltpu.CompilerParams(
            dimension_semantics=("parallel",)),
        cost_estimate=cost,
    )(x_lane, p)

    return out_lane[0, :B].reshape(B, 1)


def _init_params(key):
    """Deterministic init matching nn.Linear shapes (uniform +-1/sqrt(fan_in)).
    Weights stored as [in_features, out_features]."""
    params = []
    for (fan_in, fan_out) in _LAYER_DIMS:
        key, kw, kb = jax.random.split(key, 3)
        bound = 1.0 / np.sqrt(fan_in)
        w = jax.random.uniform(kw, (fan_in, fan_out), jnp.float32, -bound, bound)
        b = jax.random.uniform(kb, (1, fan_out), jnp.float32, -bound, bound)
        params.append((w, b))
    return params


def _reference_forward(x, params):
    mu = jnp.linspace(X_START, X_END, NUM_BASIS, dtype=jnp.float32).reshape(1, NUM_BASIS)
    diff = x - mu
    h = GAUSS_COEF * jnp.exp(-INV_TWO_SIGMA2 * diff * diff)
    for i, (w, b) in enumerate(params):
        h = h @ w + b
        if i < len(params) - 1:
            h = 0.5 * h * (1.0 + lax.erf(h * INV_SQRT2))
    return h


if __name__ == "__main__":
    key = jax.random.PRNGKey(0)
    key, kx = jax.random.split(key)

    params = _init_params(key)

    # small batch (single grid step, tb clamped to 128)
    B = 8
    x = jax.random.uniform(kx, (B, 1), jnp.float32, X_START, X_END)
    out = jax.block_until_ready(neural_network_forward(x, params))
    ref = _reference_forward(x, params)
    assert out.shape == (B, 1)
    np.testing.assert_allclose(np.asarray(out), np.asarray(ref), rtol=5e-4, atol=2e-5)

    # medium batch: tile is split so the "parallel" axis has 2 grid steps (v7x)
    key, kx2 = jax.random.split(key)
    B2 = 1024
    x2 = jax.random.uniform(kx2, (B2, 1), jnp.float32, X_START, X_END)
    out2 = jax.block_until_ready(neural_network_forward(x2, params))
    ref2 = _reference_forward(x2, params)
    assert out2.shape == (B2, 1)
    np.testing.assert_allclose(np.asarray(out2), np.asarray(ref2), rtol=5e-4, atol=2e-5)

    # larger batch exercising the wide (2048-lane) default tile over multiple steps
    key, kx3 = jax.random.split(key)
    B3 = 8192
    x3 = jax.random.uniform(kx3, (B3, 1), jnp.float32, X_START, X_END)
    out3 = jax.block_until_ready(neural_network_forward(x3, params))
    ref3 = _reference_forward(x3, params)
    assert out3.shape == (B3, 1)
    np.testing.assert_allclose(np.asarray(out3), np.asarray(ref3), rtol=5e-4, atol=2e-5)

    print("KERNEL_OK")
</pallas_src>

<mosaic_0001>
module attributes {stable_mosaic.version = 11 : i64} {
  func.func @_nn_kernel(%arg0: i32, %arg1: memref<1x128xf32, #tpu.memory_space<vmem>>, %arg2: memref<56x128xf32, #tpu.memory_space<vmem>>, %arg3: memref<1x128xf32, #tpu.memory_space<vmem>>) attributes {dimension_semantics = [#tpu.dimension_semantics<parallel>], iteration_bounds = array<i64: 1>, scalar_prefetch = 0 : i64, scratch_operands = 0 : i64, tpu.core_type = #tpu.core_type<tc>, window_params = [{transform_indices = @transform_0, window_bounds = array<i64: 1, 128>}, {pipeline_mode = #tpu.pipeline_mode<synchronous>, transform_indices = @transform_1, window_bounds = array<i64: 56, 128>}, {transform_indices = @transform_2, window_bounds = array<i64: 1, 128>}]} {
    %c0 = arith.constant 0 : index
    %c0_0 = arith.constant 0 : index
    %0 = vector.load %arg1[%c0, %c0_0] : memref<1x128xf32, #tpu.memory_space<vmem>>, vector<1x128xf32>
    %1 = tpu.iota {dimensions = array<i32: 0>} : vector<32x128xi32>
    %2 = arith.sitofp %1 : vector<32x128xi32> to vector<32x128xf32>
    %cst = arith.constant 0.0724137947 : f32
    %3 = vector.broadcast %cst : f32 to vector<32x128xf32>
    %4 = arith.mulf %2, %3 : vector<32x128xf32>
    %cst_1 = arith.constant 0.899999976 : f32
    %5 = vector.broadcast %cst_1 : f32 to vector<32x128xf32>
    %6 = arith.addf %5, %4 : vector<32x128xf32>
    %7 = vector.broadcast %0 : vector<1x128xf32> to vector<32x128xf32>
    %8 = arith.subf %7, %6 : vector<32x128xf32>
    %cst_2 = arith.constant -102.040817 : f32
    %9 = vector.broadcast %cst_2 : f32 to vector<32x128xf32>
    %10 = arith.mulf %9, %8 : vector<32x128xf32>
    %11 = arith.mulf %10, %8 : vector<32x128xf32>
    %12 = math.exp %11 : vector<32x128xf32>
    %c30_i32 = arith.constant 30 : i32
    %13 = vector.broadcast %c30_i32 : i32 to vector<32x128xi32>
    %14 = arith.cmpi eq, %1, %13 : vector<32x128xi32>
    %15 = arith.extui %14 : vector<32x128xi1> to vector<32x128xi32>
    %16 = arith.sitofp %15 : vector<32x128xi32> to vector<32x128xf32>
    %c30_i32_3 = arith.constant 30 : i32
    %17 = vector.broadcast %c30_i32_3 : i32 to vector<32x128xi32>
    %18 = arith.cmpi slt, %1, %17 : vector<32x128xi32>
    %19 = arith.select %18, %12, %16 : vector<32x128xi1>, vector<32x128xf32>
    %20 = tpu.iota {dimensions = array<i32: 0>} : vector<8x128xi32>
    %c5_i32 = arith.constant 5 : i32
    %21 = vector.broadcast %c5_i32 : i32 to vector<8x128xi32>
    %22 = arith.cmpi eq, %20, %21 : vector<8x128xi32>
    %23 = arith.extui %22 : vector<8x128xi1> to vector<8x128xi32>
    %24 = arith.sitofp %23 : vector<8x128xi32> to vector<8x128xf32>
    %c0_4 = arith.constant 0 : index
    %c0_5 = arith.constant 0 : index
    %25 = vector.load %arg2[%c0_4, %c0_5] : memref<56x128xf32, #tpu.memory_space<vmem>>, vector<8x32xf32>
    %cst_6 = arith.constant dense<0.000000e+00> : vector<8x128xf32>
    %26 = tpu.matmul %25, %19, %cst_6 {dimension_numbers = #tpu.dot_dimension_numbers<[1], [0], [0], [1], [0, 0, 1, 1], [], []>} : vector<8x32xf32>, vector<32x128xf32>, vector<8x128xf32> -> vector<8x128xf32>
    %cst_7 = arith.constant 5.000000e-01 : f32
    %27 = vector.broadcast %cst_7 : f32 to vector<8x128xf32>
    %28 = arith.mulf %27, %26 : vector<8x128xf32>
    %cst_8 = arith.constant 0.707106769 : f32
    %29 = vector.broadcast %cst_8 : f32 to vector<8x128xf32>
    %30 = arith.mulf %26, %29 : vector<8x128xf32>
    %31 = math.erf %30 : vector<8x128xf32>
    %cst_9 = arith.constant 1.000000e+00 : f32
    %32 = vector.broadcast %cst_9 : f32 to vector<8x128xf32>
    %33 = arith.addf %32, %31 : vector<8x128xf32>
    %34 = arith.mulf %28, %33 : vector<8x128xf32>
    %35 = arith.addf %34, %24 : vector<8x128xf32>
    %c8 = arith.constant 8 : index
    %c0_10 = arith.constant 0 : index
    %36 = vector.load %arg2[%c8, %c0_10] : memref<56x128xf32, #tpu.memory_space<vmem>>, vector<8x8xf32>
    %cst_11 = arith.constant dense<0.000000e+00> : vector<8x128xf32>
    %37 = tpu.matmul %36, %35, %cst_11 {dimension_numbers = #tpu.dot_dimension_numbers<[1], [0], [0], [1], [0, 0, 1, 1], [], []>} : vector<8x8xf32>, vector<8x128xf32>, vector<8x128xf32> -> vector<8x128xf32>
    %cst_12 = arith.constant 5.000000e-01 : f32
    %38 = vector.broadcast %cst_12 : f32 to vector<8x128xf32>
    %39 = arith.mulf %38, %37 : vector<8x128xf32>
    %cst_13 = arith.constant 0.707106769 : f32
    %40 = vector.broadcast %cst_13 : f32 to vector<8x128xf32>
    %41 = arith.mulf %37, %40 : vector<8x128xf32>
    %42 = math.erf %41 : vector<8x128xf32>
    %cst_14 = arith.constant 1.000000e+00 : f32
    %43 = vector.broadcast %cst_14 : f32 to vector<8x128xf32>
    %44 = arith.addf %43, %42 : vector<8x128xf32>
    %45 = arith.mulf %39, %44 : vector<8x128xf32>
    %46 = arith.addf %45, %24 : vector<8x128xf32>
    %c16 = arith.constant 16 : index
    %c0_15 = arith.constant 0 : index
    %47 = vector.load %arg2[%c16, %c0_15] : memref<56x128xf32, #tpu.memory_space<vmem>>, vector<8x8xf32>
    %cst_16 = arith.constant dense<0.000000e+00> : vector<8x128xf32>
    %48 = tpu.matmul %47, %46, %cst_16 {dimension_numbers = #tpu.dot_dimension_numbers<[1], [0], [0], [1], [0, 0, 1, 1], [], []>} : vector<8x8xf32>, vector<8x128xf32>, vector<8x128xf32> -> vector<8x128xf32>
    %cst_17 = arith.constant 5.000000e-01 : f32
    %49 = vector.broadcast %cst_17 : f32 to vector<8x128xf32>
    %50 = arith.mulf %49, %48 : vector<8x128xf32>
    %cst_18 = arith.constant 0.707106769 : f32
    %51 = vector.broadcast %cst_18 : f32 to vector<8x128xf32>
    %52 = arith.mulf %48, %51 : vector<8x128xf32>
    %53 = math.erf %52 : vector<8x128xf32>
    %cst_19 = arith.constant 1.000000e+00 : f32
    %54 = vector.broadcast %cst_19 : f32 to vector<8x128xf32>
    %55 = arith.addf %54, %53 : vector<8x128xf32>
    %56 = arith.mulf %50, %55 : vector<8x128xf32>
    %57 = arith.addf %56, %24 : vector<8x128xf32>
    %c24 = arith.constant 24 : index
    %c0_20 = arith.constant 0 : index
    %58 = vector.load %arg2[%c24, %c0_20] : memref<56x128xf32, #tpu.memory_space<vmem>>, vector<8x8xf32>
    %cst_21 = arith.constant dense<0.000000e+00> : vector<8x128xf32>
    %59 = tpu.matmul %58, %57, %cst_21 {dimension_numbers = #tpu.dot_dimension_numbers<[1], [0], [0], [1], [0, 0, 1, 1], [], []>} : vector<8x8xf32>, vector<8x128xf32>, vector<8x128xf32> -> vector<8x128xf32>
    %cst_22 = arith.constant 5.000000e-01 : f32
    %60 = vector.broadcast %cst_22 : f32 to vector<8x128xf32>
    %61 = arith.mulf %60, %59 : vector<8x128xf32>
    %cst_23 = arith.constant 0.707106769 : f32
    %62 = vector.broadcast %cst_23 : f32 to vector<8x128xf32>
    %63 = arith.mulf %59, %62 : vector<8x128xf32>
    %64 = math.erf %63 : vector<8x128xf32>
    %cst_24 = arith.constant 1.000000e+00 : f32
    %65 = vector.broadcast %cst_24 : f32 to vector<8x128xf32>
    %66 = arith.addf %65, %64 : vector<8x128xf32>
    %67 = arith.mulf %61, %66 : vector<8x128xf32>
    %68 = arith.addf %67, %24 : vector<8x128xf32>
    %c32 = arith.constant 32 : index
    %c0_25 = arith.constant 0 : index
    %69 = vector.load %arg2[%c32, %c0_25] : memref<56x128xf32, #tpu.memory_space<vmem>>, vector<8x8xf32>
    %cst_26 = arith.constant dense<0.000000e+00> : vector<8x128xf32>
    %70 = tpu.matmul %69, %68, %cst_26 {dimension_numbers = #tpu.dot_dimension_numbers<[1], [0], [0], [1], [0, 0, 1, 1], [], []>} : vector<8x8xf32>, vector<8x128xf32>, vector<8x128xf32> -> vector<8x128xf32>
    %cst_27 = arith.constant 5.000000e-01 : f32
    %71 = vector.broadcast %cst_27 : f32 to vector<8x128xf32>
    %72 = arith.mulf %71, %70 : vector<8x128xf32>
    %cst_28 = arith.constant 0.707106769 : f32
    %73 = vector.broadcast %cst_28 : f32 to vector<8x128xf32>
    %74 = arith.mulf %70, %73 : vector<8x128xf32>
    %75 = math.erf %74 : vector<8x128xf32>
    %cst_29 = arith.constant 1.000000e+00 : f32
    %76 = vector.broadcast %cst_29 : f32 to vector<8x128xf32>
    %77 = arith.addf %76, %75 : vector<8x128xf32>
    %78 = arith.mulf %72, %77 : vector<8x128xf32>
    %79 = arith.addf %78, %24 : vector<8x128xf32>
    %c40 = arith.constant 40 : index
    %c0_30 = arith.constant 0 : index
    %80 = vector.load %arg2[%c40, %c0_30] : memref<56x128xf32, #tpu.memory_space<vmem>>, vector<8x8xf32>
    %cst_31 = arith.constant dense<0.000000e+00> : vector<8x128xf32>
    %81 = tpu.matmul %80, %79, %cst_31 {dimension_numbers = #tpu.dot_dimension_numbers<[1], [0], [0], [1], [0, 0, 1, 1], [], []>} : vector<8x8xf32>, vector<8x128xf32>, vector<8x128xf32> -> vector<8x128xf32>
    %cst_32 = arith.constant 5.000000e-01 : f32
    %82 = vector.broadcast %cst_32 : f32 to vector<8x128xf32>
    %83 = arith.mulf %82, %81 : vector<8x128xf32>
    %cst_33 = arith.constant 0.707106769 : f32
    %84 = vector.broadcast %cst_33 : f32 to vector<8x128xf32>
    %85 = arith.mulf %81, %84 : vector<8x128xf32>
    %86 = math.erf %85 : vector<8x128xf32>
    %cst_34 = arith.constant 1.000000e+00 : f32
    %87 = vector.broadcast %cst_34 : f32 to vector<8x128xf32>
    %88 = arith.addf %87, %86 : vector<8x128xf32>
    %89 = arith.mulf %83, %88 : vector<8x128xf32>
    %90 = arith.addf %89, %24 : vector<8x128xf32>
    %c48 = arith.constant 48 : index
    %c0_35 = arith.constant 0 : index
    %91 = vector.load %arg2[%c48, %c0_35] : memref<56x128xf32, #tpu.memory_space<vmem>>, vector<8x8xf32>
    %cst_36 = arith.constant dense<0.000000e+00> : vector<8x128xf32>
    %92 = tpu.matmul %91, %90, %cst_36 {dimension_numbers = #tpu.dot_dimension_numbers<[1], [0], [0], [1], [0, 0, 1, 1], [], []>} : vector<8x8xf32>, vector<8x128xf32>, vector<8x128xf32> -> vector<8x128xf32>
    %93 = vector.extract_strided_slice %92 {offsets = [0, 0], sizes = [1, 128], strides = [1, 1]} : vector<8x128xf32> to vector<1x128xf32>
    %c0_37 = arith.constant 0 : index
    %c0_38 = arith.constant 0 : index
    %94 = vector.load %arg3[%c0_37, %c0_38] : memref<1x128xf32, #tpu.memory_space<vmem>>, vector<1x128xf32>
    tpu.vector_store %arg3[%c0_37, %c0_38], %93 {strides = array<i32>} : memref<1x128xf32, #tpu.memory_space<vmem>>, vector<1x128xf32>,
    return
  }
  func.func @transform_0(%arg0: i32) -> (i32, i32) {
    %c0_i32 = arith.constant 0 : i32
    %c0_i32_0 = arith.constant 0 : i32
    return %c0_i32, %arg0 : i32, i32
  }
  func.func @transform_1(%arg0: i32) -> (i32, i32) {
    %c0_i32 = arith.constant 0 : i32
    %c0_i32_0 = arith.constant 0 : i32
    %c0_i32_1 = arith.constant 0 : i32
    return %c0_i32, %c0_i32_0 : i32, i32
  }
  func.func @transform_2(%arg0: i32) -> (i32, i32) {
    %c0_i32 = arith.constant 0 : i32
    %c0_i32_0 = arith.constant 0 : i32
    return %c0_i32, %arg0 : i32, i32
  }
}

</mosaic_0001>

<bundles_post_ra>
// kernel: tpu_custom_call.1
= control target key start
LH: loop header
LB: loop body
LE: loop exit
PB: predicated region body
PF: predicated region fallthrough
CT: control target
= control target key end

     0   :  { %7 = vsyncpa [#allocation3], 0  ;;  %s729_s0 = inlined_call_operand.hbm [shape: f32[1,128], index: 0, kind: input, shape index: {}]   ;;  %s730_s1 = inlined_call_operand.hbm [shape: f32[56,128], index: 1, kind: input, shape index: {}]   ;;  %s731_s2 = inlined_call_operand.hbm [shape: f32[1,128], index: 2, kind: output, shape index: {}]  }
   0x1   :  { %8 = vsyncpa [#allocation6], 0 }
   0x2   :  { %9 = vsyncpa [#allocation4], 0  ;;  %s15_s11 = sshll.u32 %s729_s0, 4  ;;  %s685_s12 = smov [#allocation2]   ;;  %s16_s11 = int_to_ptr.hbm [resolvable:$true] %s15_s11 }
   0x3   :  { %s17_s13 = sshll.u32 %s685_s12, 4  ;;  %s25_s16 = sshll.u32 %s730_s1, 4  ;;  %s18_s13 = int_to_ptr.vmem [resolvable:$true] %s17_s13  ;;  %s26_s16 = int_to_ptr.hbm [resolvable:$true] %s25_s16 }
   0x4   :  { %20 = dma.hbm_to_vmem [thread:$0]  %s16_s11, 16, %s18_s13, [#allocation3]  }
   0x5   :  { %s686_s17 = smov [#allocation5]   ;;  %s687_s19 = smov 128  }
   0x6   :  { %s27_s18 = sshll.u32 %s686_s17, 4  ;;  %s688_s20 = smov 8   ;;  %s28_s18 = int_to_ptr.vmem [resolvable:$true] %s27_s18 }
   0x7   :  { %33 = dma.hbm_to_vmem [thread:$0]  %s26_s16, 896, %s28_s18, [#allocation6], %s687_s19, %s687_s19, %s688_s20  }
   0x8   :  { %679 = dma.done.wait [#allocation3], 16  }
   0x9   :  { %680 = vsyncadd [#allocation3], 4294967280 }
   0xa   :  { %681 = dma.done.wait [#allocation6], 896  }
   0xb   :  { %682 = vsyncadd [#allocation6], 4294966400  ;;  %v43_v0 = vlaneseq  ;;  %v689_v5 = vmov 0.0   ;;  %v586_v10 = vld [vmem:[#allocation2] ss:$0 sm:$0xff]  ;;  %v106_v42 = vld [vmem:[#allocation5] sm:$0xff] }
   0xc   :  { %vm107_vm3 = vcmask 261120   ;;  %vm177_vm8 = vcmask 64512   ;;  %s690_s0 = smov [#allocation7]   ;;  %s554_s23 = sshll.u32 %s731_s2, 4  ;;  %s555_s23 = int_to_ptr.hbm [resolvable:$true] %s554_s23 }
   0xd   :  { %v44_v1 = vshrl.u32 %v43_v0, 7  ;;  %s552_s1 = sshll.u32 %s690_s0, 4  ;;  %s553_s1 = int_to_ptr.vmem [resolvable:$true] %s552_s1 }
   0xf   :  { %v47_v2 = vadd.s32 24, %v44_v1  ;;  %vm103_vm0 = vcmp.eq.s32.totalorder %v44_v1, 5  ;;  %v46_v3 = vadd.s32 16, %v44_v1  ;;  %v45_v4 = vadd.s32 8, %v44_v1 }
  0x10   :  { %v712_v6 = vsel %vm103_vm0, 1.0, %v689_v5  ;;  %v48_v7 = vcvt.s32.f32 %v44_v1 }
  0x11   :  { %v51_v8 = vcvt.s32.f32 %v47_v2  ;;  %v50_v9 = vcvt.s32.f32 %v46_v3  ;;  %v49_v11 = vcvt.s32.f32 %v45_v4  ;;  %vm86_vm1 = vcmp.eq.s32.totalorder %v47_v2, 30 }
  0x12   :  { %v52_v14 = vmul.f32 0.072413795, %v48_v7  ;;  %v565_v36 = vsel %vm86_vm1, 1.0, %v689_v5  ;;  %vm98_vm2 = vcmp.lt.s32.totalorder %v47_v2, 30 }
  0x13   :  { %v55_v12 = vmul.f32 0.072413795, %v51_v8  ;;  %v54_v13 = vmul.f32 0.072413795, %v50_v9  ;;  %v53_v15 = vmul.f32 0.072413795, %v49_v11 }
  0x14   :  { %v56_v18 = vadd.f32 0.9, %v52_v14 }
  0x15   :  { %v59_v16 = vadd.f32 0.9, %v55_v12  ;;  %v58_v17 = vadd.f32 0.9, %v54_v13  ;;  %v57_v19 = vadd.f32 0.9, %v53_v15 }
  0x16   :  { %v63_v22 = vsub.f32 %v586_v10, %v56_v18 }
  0x17   :  { %v66_v20 = vsub.f32 %v586_v10, %v59_v16  ;;  %v65_v21 = vsub.f32 %v586_v10, %v58_v17  ;;  %v64_v23 = vsub.f32 %v586_v10, %v57_v19 }
  0x18   :  { %v67_v26 = vmul.f32 -102.04082, %v63_v22 }
  0x19   :  { %v70_v24 = vmul.f32 -102.04082, %v66_v20  ;;  %v69_v25 = vmul.f32 -102.04082, %v65_v21  ;;  %v68_v27 = vmul.f32 -102.04082, %v64_v23 }
  0x1a   :  { %v71_v31 = vmul.f32 %v67_v26, %v63_v22 }
  0x1b   :  { %v74_v28 = vmul.f32 %v70_v24, %v66_v20  ;;  %v73_v29 = vmul.f32 %v69_v25, %v65_v21  ;;  %v72_v30 = vmul.f32 %v68_v27, %v64_v23  ;;  %v176_v21 = vld [vmem:[#allocation5 + $0x8] sm:$0xff] }
  0x1c   :  { %v75_v35 = vmul.f32 1.442695, %v71_v31 }
  0x1d   :  { %v81_v32 = vmul.f32 1.442695, %v74_v28  ;;  %v79_v33 = vmul.f32 1.442695, %v73_v29  ;;  %v77_v34 = vmul.f32 1.442695, %v72_v30 }
  0x1f   :  { %587 = vpow2.f32 %v81_v32 }
  0x20   :  { %589 = vpow2.f32 %v79_v33 }
  0x21   :  { %591 = vpow2.f32 %v77_v34 }
  0x22   :  { %593 = vpow2.f32 %v75_v35 }
  0x25   :  { %v588_v37 = vpop.eup %587 }
  0x26   :  { %v590_v38 = vpop.eup %589  ;;  %v102_v39 = vsel %vm98_vm2, %v588_v37, %v565_v36 }
  0x27   :  { %123 = vmatpush.msra.mxu0 %v102_v39  ;;  %v592_v40 = vpop.eup %591 }
  0x28   :  { %v594_v41 = vpop.eup %593 }
  0x29   :  { %124 = vmatpush.msra.mxu0 %v590_v38 }
  0x2b   :  { %125 = vmatpush.msra.mxu0 %v592_v40 }
  0x2d   :  { %126 = vmatpush.msra.mxu0 %v594_v41 }
  0x2e   :  { %567 = vmatmul.msk.f32.vlgmr.msra.gmra.mxu0 %vm107_vm3, %v106_v42 }
  0xab   :  { %v128_v43 = vpop.f32.mrf.mxu0 }
  0xac   :  { %v132_v44 = vmul.f32 0.70710677, %v128_v43  ;;  %v131_v17 = vmul.f32 0.5, %v128_v43 }
  0xae   :  { %v133_v45 = vmul.f32 %v132_v44, %v132_v44 }
  0xb0   :  { %v134_v46 = vmin.f32 %v133_v45, 16.0 }
  0xb2   :  { %v135_v47 = vmul.f32 2.1237322e-06, %v134_v46  ;;  %v146_v48 = vmul.f32 3.8918573e-05, %v134_v46 }
  0xb4   :  { %v136_v49 = vadd.f32 0.00028619796, %v135_v47  ;;  %v147_v50 = vadd.f32 0.001143296, %v146_v48 }
  0xb6   :  { %v137_v51 = vmul.f32 %v136_v49, %v134_v46  ;;  %v148_v52 = vmul.f32 %v147_v50, %v134_v46 }
  0xb8   :  { %v149_v53 = vadd.f32 0.014752088, %v148_v52  ;;  %v138_v54 = vadd.f32 0.0036580483, %v137_v51 }
  0xba   :  { %v150_v55 = vmul.f32 %v149_v53, %v134_v46  ;;  %v139_v57 = vmul.f32 %v138_v54, %v134_v46 }
  0xbc   :  { %v151_v56 = vadd.f32 0.112945676, %v150_v55  ;;  %v140_v60 = vadd.f32 0.05243302, %v139_v57 }
  0xbe   :  { %v152_v58 = vmul.f32 %v151_v56, %v134_v46  ;;  %v141_v63 = vmul.f32 %v140_v60, %v134_v46 }
  0xc0   :  { %v153_v59 = vadd.f32 0.4994258, %v152_v58  ;;  %v142_v0 = vadd.f32 0.18741608, %v141_v63  ;;  %v246_v63 = vld [vmem:[#allocation5 + $0x10] sm:$0xff] }
  0xc2   :  { %v154_v61 = vmul.f32 %v153_v59, %v134_v46  ;;  %v143_v2 = vmul.f32 %v142_v0, %v134_v46 }
  0xc4   :  { %v155_v62 = vadd.f32 1.0, %v154_v61  ;;  %v144_v7 = vadd.f32 1.1283791, %v143_v2 }
  0xc6   :  { %595 = vrcp.f32 %v155_v62  ;;  %v167_v5 = vand.u32 2147483648, %v155_v62  ;;  %v165_v9 = vand.u32 2147483647, %v155_v62  ;;  %vm161_vm5 = vweird.f32 %v155_v62 }
  0xc7   :  { %v145_v12 = vmul.f32 %v144_v7, %v132_v44 }
  0xc8   :  { %v168_v11 = vor.u32 1.1754944e-38, %v167_v5  ;;  %vm166_vm7 = vcmp.eq.f32.partialorder %v165_v9, 8.507059e+37 }
  0xcc   :  { %v596_v1 = vpop.eup %595 }
  0xcd   :  { %v157_v3 = vmul.f32 %v596_v1, %v155_v62  ;;  %vm162_vm4 = vweird.f32 %v596_v1 }
  0xce   :  { %vm163_vm6 = vmor %vm161_vm5, %vm162_vm4 }
  0xcf   :  { %v158_v4 = vsub.f32 1.0, %v157_v3 }
  0xd1   :  { %v159_v8 = vmul.f32 %v596_v1, %v158_v4 }
  0xd3   :  { %v160_v10 = vadd.f32 %v596_v1, %v159_v8 }
  0xd5   :  { %v164_v13 = vsel %vm163_vm6, %v596_v1, %v160_v10 }
  0xd6   :  { %v169_v14 = vsel %vm166_vm7, %v168_v11, %v164_v13 }
  0xd7   :  { %v170_v15 = vmul.f32 %v169_v14, %v145_v12 }
  0xd9   :  { %v568_v16 = vclamps-f32 %v170_v15, 1.0 }
  0xdb   :  { %v173_v18 = vadd.f32 1.0, %v568_v16 }
  0xdd   :  { %v174_v19 = vmul.f32 %v173_v18, %v131_v17 }
  0xdf   :  { %v175_v20 = vadd.f32 %v712_v6, %v174_v19 }
  0xe1   :  { %196 = vmatpush.msra.mxu1 %v175_v20 }
  0xe2   :  { %569 = vmatmul.msk.f32.vlgmr.msra.gmra.mxu1 %vm177_vm8, %v176_v21 }
 0x15f   :  { %v198_v22 = vpop.f32.mrf.mxu1 }
 0x160   :  { %v202_v23 = vmul.f32 0.70710677, %v198_v22  ;;  %v201_v59 = vmul.f32 0.5, %v198_v22 }
 0x162   :  { %v203_v24 = vmul.f32 %v202_v23, %v202_v23 }
 0x164   :  { %v204_v25 = vmin.f32 %v203_v24, 16.0 }
 0x166   :  { %v205_v26 = vmul.f32 2.1237322e-06, %v204_v25  ;;  %v216_v27 = vmul.f32 3.8918573e-05, %v204_v25 }
 0x168   :  { %v206_v28 = vadd.f32 0.00028619796, %v205_v26  ;;  %v217_v29 = vadd.f32 0.001143296, %v216_v27 }
 0x16a   :  { %v207_v30 = vmul.f32 %v206_v28, %v204_v25  ;;  %v218_v31 = vmul.f32 %v217_v29, %v204_v25 }
 0x16c   :  { %v219_v32 = vadd.f32 0.014752088, %v218_v31  ;;  %v208_v33 = vadd.f32 0.0036580483, %v207_v30 }
 0x16e   :  { %v220_v34 = vmul.f32 %v219_v32, %v204_v25  ;;  %v209_v36 = vmul.f32 %v208_v33, %v204_v25 }
 0x170   :  { %v221_v35 = vadd.f32 0.112945676, %v220_v34  ;;  %v210_v39 = vadd.f32 0.05243302, %v209_v36 }
 0x172   :  { %v222_v37 = vmul.f32 %v221_v35, %v204_v25  ;;  %v211_v42 = vmul.f32 %v210_v39, %v204_v25 }
 0x174   :  { %v223_v38 = vadd.f32 0.4994258, %v222_v37  ;;  %v212_v43 = vadd.f32 0.18741608, %v211_v42  ;;  %v315_v42 = vld [vmem:[#allocation5 + $0x18] sm:$0xff] }
 0x176   :  { %v224_v40 = vmul.f32 %v223_v38, %v204_v25  ;;  %v213_v45 = vmul.f32 %v212_v43, %v204_v25 }
 0x178   :  { %v225_v41 = vadd.f32 1.0, %v224_v40  ;;  %v214_v49 = vadd.f32 1.1283791, %v213_v45 }
 0x17a   :  { %597 = vrcp.f32 %v225_v41  ;;  %v237_v48 = vand.u32 2147483648, %v225_v41  ;;  %v235_v51 = vand.u32 2147483647, %v225_v41  ;;  %vm231_vm10 = vweird.f32 %v225_v41 }
 0x17b   :  { %v215_v54 = vmul.f32 %v214_v49, %v202_v23 }
 0x17c   :  { %v238_v53 = vor.u32 1.1754944e-38, %v237_v48  ;;  %vm236_vm12 = vcmp.eq.f32.partialorder %v235_v51, 8.507059e+37 }
 0x180   :  { %v598_v44 = vpop.eup %597 }
 0x181   :  { %v227_v46 = vmul.f32 %v598_v44, %v225_v41  ;;  %vm232_vm9 = vweird.f32 %v598_v44 }
 0x182   :  { %vm233_vm11 = vmor %vm231_vm10, %vm232_vm9 }
 0x183   :  { %v228_v47 = vsub.f32 1.0, %v227_v46 }
 0x185   :  { %v229_v50 = vmul.f32 %v598_v44, %v228_v47 }
 0x187   :  { %v230_v52 = vadd.f32 %v598_v44, %v229_v50 }
 0x189   :  { %v234_v55 = vsel %vm233_vm11, %v598_v44, %v230_v52 }
 0x18a   :  { %v239_v56 = vsel %vm236_vm12, %v238_v53, %v234_v55 }
 0x18b   :  { %v240_v57 = vmul.f32 %v239_v56, %v215_v54 }
 0x18d   :  { %v570_v58 = vclamps-f32 %v240_v57, 1.0 }
 0x18f   :  { %v243_v60 = vadd.f32 1.0, %v570_v58 }
 0x191   :  { %v244_v61 = vmul.f32 %v243_v60, %v201_v59 }
 0x193   :  { %v245_v62 = vadd.f32 %v712_v6, %v244_v61 }
 0x195   :  { %265 = vmatpush.msra.mxu2 %v245_v62 }
 0x196   :  { %571 = vmatmul.msk.f32.vlgmr.msra.gmra.mxu2 %vm177_vm8, %v246_v63 }
 0x219   :  { %v267_v0 = vpop.f32.mrf.mxu2 }
 0x21a   :  { %v271_v1 = vmul.f32 0.70710677, %v267_v0  ;;  %v270_v38 = vmul.f32 0.5, %v267_v0 }
 0x21c   :  { %v272_v2 = vmul.f32 %v271_v1, %v271_v1 }
 0x21e   :  { %v273_v3 = vmin.f32 %v272_v2, 16.0 }
 0x220   :  { %v274_v4 = vmul.f32 2.1237322e-06, %v273_v3  ;;  %v285_v5 = vmul.f32 3.8918573e-05, %v273_v3 }
 0x222   :  { %v275_v7 = vadd.f32 0.00028619796, %v274_v4  ;;  %v286_v8 = vadd.f32 0.001143296, %v285_v5 }
 0x224   :  { %v276_v9 = vmul.f32 %v275_v7, %v273_v3  ;;  %v287_v10 = vmul.f32 %v286_v8, %v273_v3 }
 0x226   :  { %v288_v11 = vadd.f32 0.014752088, %v287_v10  ;;  %v277_v12 = vadd.f32 0.0036580483, %v276_v9 }
 0x228   :  { %v289_v13 = vmul.f32 %v288_v11, %v273_v3  ;;  %v278_v15 = vmul.f32 %v277_v12, %v273_v3 }
 0x22a   :  { %v290_v14 = vadd.f32 0.112945676, %v289_v13  ;;  %v279_v18 = vadd.f32 0.05243302, %v278_v15 }
 0x22c   :  { %v291_v16 = vmul.f32 %v290_v14, %v273_v3  ;;  %v280_v21 = vmul.f32 %v279_v18, %v273_v3 }
 0x22e   :  { %v292_v17 = vadd.f32 0.4994258, %v291_v16  ;;  %v281_v22 = vadd.f32 0.18741608, %v280_v21  ;;  %v384_v21 = vld [vmem:[#allocation5 + $0x20] sm:$0xff] }
 0x230   :  { %v293_v19 = vmul.f32 %v292_v17, %v273_v3  ;;  %v282_v24 = vmul.f32 %v281_v22, %v273_v3 }
 0x232   :  { %v294_v20 = vadd.f32 1.0, %v293_v19  ;;  %v283_v28 = vadd.f32 1.1283791, %v282_v24 }
 0x234   :  { %599 = vrcp.f32 %v294_v20  ;;  %v306_v27 = vand.u32 2147483648, %v294_v20  ;;  %v304_v30 = vand.u32 2147483647, %v294_v20  ;;  %vm300_vm14 = vweird.f32 %v294_v20 }
 0x235   :  { %v284_v33 = vmul.f32 %v283_v28, %v271_v1 }
 0x236   :  { %v307_v32 = vor.u32 1.1754944e-38, %v306_v27  ;;  %vm305_vm0 = vcmp.eq.f32.partialorder %v304_v30, 8.507059e+37 }
 0x23a   :  { %v600_v23 = vpop.eup %599 }
 0x23b   :  { %v296_v25 = vmul.f32 %v600_v23, %v294_v20  ;;  %vm301_vm13 = vweird.f32 %v600_v23 }
 0x23c   :  { %vm302_vm15 = vmor %vm300_vm14, %vm301_vm13 }
 0x23d   :  { %v297_v26 = vsub.f32 1.0, %v296_v25 }
 0x23f   :  { %v298_v29 = vmul.f32 %v600_v23, %v297_v26 }
 0x241   :  { %v299_v31 = vadd.f32 %v600_v23, %v298_v29 }
 0x243   :  { %v303_v34 = vsel %vm302_vm15, %v600_v23, %v299_v31 }
 0x244   :  { %v308_v35 = vsel %vm305_vm0, %v307_v32, %v303_v34 }
 0x245   :  { %v309_v36 = vmul.f32 %v308_v35, %v284_v33 }
 0x247   :  { %v572_v37 = vclamps-f32 %v309_v36, 1.0 }
 0x249   :  { %v312_v39 = vadd.f32 1.0, %v572_v37 }
 0x24b   :  { %v313_v40 = vmul.f32 %v312_v39, %v270_v38 }
 0x24d   :  { %v314_v41 = vadd.f32 %v712_v6, %v313_v40 }
 0x24f   :  { %334 = vmatpush.msra.mxu3 %v314_v41 }
 0x250   :  { %573 = vmatmul.msk.f32.vlgmr.msra.gmra.mxu3 %vm177_vm8, %v315_v42 }
 0x2d3   :  { %v336_v43 = vpop.f32.mrf.mxu3 }
 0x2d4   :  { %v340_v44 = vmul.f32 0.70710677, %v336_v43  ;;  %v339_v17 = vmul.f32 0.5, %v336_v43 }
 0x2d6   :  { %v341_v45 = vmul.f32 %v340_v44, %v340_v44 }
 0x2d8   :  { %v342_v46 = vmin.f32 %v341_v45, 16.0 }
 0x2da   :  { %v343_v47 = vmul.f32 2.1237322e-06, %v342_v46  ;;  %v354_v48 = vmul.f32 3.8918573e-05, %v342_v46 }
 0x2dc   :  { %v344_v49 = vadd.f32 0.00028619796, %v343_v47  ;;  %v355_v50 = vadd.f32 0.001143296, %v354_v48 }
 0x2de   :  { %v345_v51 = vmul.f32 %v344_v49, %v342_v46  ;;  %v356_v52 = vmul.f32 %v355_v50, %v342_v46 }
 0x2e0   :  { %v357_v53 = vadd.f32 0.014752088, %v356_v52  ;;  %v346_v54 = vadd.f32 0.0036580483, %v345_v51 }
 0x2e2   :  { %v358_v55 = vmul.f32 %v357_v53, %v342_v46  ;;  %v347_v57 = vmul.f32 %v346_v54, %v342_v46 }
 0x2e4   :  { %v359_v56 = vadd.f32 0.112945676, %v358_v55  ;;  %v348_v60 = vadd.f32 0.05243302, %v347_v57 }
 0x2e6   :  { %v360_v58 = vmul.f32 %v359_v56, %v342_v46  ;;  %v349_v63 = vmul.f32 %v348_v60, %v342_v46 }
 0x2e8   :  { %v361_v59 = vadd.f32 0.4994258, %v360_v58  ;;  %v350_v0 = vadd.f32 0.18741608, %v349_v63  ;;  %v453_v63 = vld [vmem:[#allocation5 + $0x28] sm:$0xff] }
 0x2ea   :  { %v362_v61 = vmul.f32 %v361_v59, %v342_v46  ;;  %v351_v2 = vmul.f32 %v350_v0, %v342_v46 }
 0x2ec   :  { %v363_v62 = vadd.f32 1.0, %v362_v61  ;;  %v352_v7 = vadd.f32 1.1283791, %v351_v2 }
 0x2ee   :  { %601 = vrcp.f32 %v363_v62  ;;  %v375_v5 = vand.u32 2147483648, %v363_v62  ;;  %v373_v9 = vand.u32 2147483647, %v363_v62  ;;  %vm369_vm2 = vweird.f32 %v363_v62 }
 0x2ef   :  { %v353_v12 = vmul.f32 %v352_v7, %v340_v44 }
 0x2f0   :  { %v376_v11 = vor.u32 1.1754944e-38, %v375_v5  ;;  %vm374_vm4 = vcmp.eq.f32.partialorder %v373_v9, 8.507059e+37 }
 0x2f4   :  { %v602_v1 = vpop.eup %601 }
 0x2f5   :  { %v365_v3 = vmul.f32 %v602_v1, %v363_v62  ;;  %vm370_vm1 = vweird.f32 %v602_v1 }
 0x2f6   :  { %vm371_vm3 = vmor %vm369_vm2, %vm370_vm1 }
 0x2f7   :  { %v366_v4 = vsub.f32 1.0, %v365_v3 }
 0x2f9   :  { %v367_v8 = vmul.f32 %v602_v1, %v366_v4 }
 0x2fb   :  { %v368_v10 = vadd.f32 %v602_v1, %v367_v8 }
 0x2fd   :  { %v372_v13 = vsel %vm371_vm3, %v602_v1, %v368_v10 }
 0x2fe   :  { %v377_v14 = vsel %vm374_vm4, %v376_v11, %v372_v13 }
 0x2ff   :  { %v378_v15 = vmul.f32 %v377_v14, %v353_v12 }
 0x301   :  { %v574_v16 = vclamps-f32 %v378_v15, 1.0 }
 0x303   :  { %v381_v18 = vadd.f32 1.0, %v574_v16 }
 0x305   :  { %v382_v19 = vmul.f32 %v381_v18, %v339_v17 }
 0x307   :  { %v383_v20 = vadd.f32 %v712_v6, %v382_v19 }
 0x309   :  { %403 = vmatpush.msrb.mxu1 %v383_v20 }
 0x30a   :  { %575 = vmatmul.msk.f32.vlgmr.msrb.gmra.mxu1 %vm177_vm8, %v384_v21 }
 0x387   :  { %v405_v22 = vpop.f32.mrf.mxu1 }
 0x388   :  { %v409_v23 = vmul.f32 0.70710677, %v405_v22  ;;  %v408_v59 = vmul.f32 0.5, %v405_v22 }
 0x38a   :  { %v410_v24 = vmul.f32 %v409_v23, %v409_v23 }
 0x38c   :  { %v411_v25 = vmin.f32 %v410_v24, 16.0 }
 0x38e   :  { %v412_v26 = vmul.f32 2.1237322e-06, %v411_v25  ;;  %v423_v27 = vmul.f32 3.8918573e-05, %v411_v25 }
 0x390   :  { %v413_v28 = vadd.f32 0.00028619796, %v412_v26  ;;  %v424_v29 = vadd.f32 0.001143296, %v423_v27 }
 0x392   :  { %v414_v30 = vmul.f32 %v413_v28, %v411_v25  ;;  %v425_v31 = vmul.f32 %v424_v29, %v411_v25 }
 0x394   :  { %v426_v32 = vadd.f32 0.014752088, %v425_v31  ;;  %v415_v33 = vadd.f32 0.0036580483, %v414_v30 }
 0x396   :  { %v427_v34 = vmul.f32 %v426_v32, %v411_v25  ;;  %v416_v36 = vmul.f32 %v415_v33, %v411_v25 }
 0x398   :  { %v428_v35 = vadd.f32 0.112945676, %v427_v34  ;;  %v417_v39 = vadd.f32 0.05243302, %v416_v36 }
 0x39a   :  { %v429_v37 = vmul.f32 %v428_v35, %v411_v25  ;;  %v418_v42 = vmul.f32 %v417_v39, %v411_v25 }
 0x39c   :  { %v430_v38 = vadd.f32 0.4994258, %v429_v37  ;;  %v419_v43 = vadd.f32 0.18741608, %v418_v42  ;;  %v522_v42 = vld [vmem:[#allocation5 + $0x30] sm:$0xff] }
 0x39e   :  { %v431_v40 = vmul.f32 %v430_v38, %v411_v25  ;;  %v420_v45 = vmul.f32 %v419_v43, %v411_v25 }
 0x3a0   :  { %v432_v41 = vadd.f32 1.0, %v431_v40  ;;  %v421_v49 = vadd.f32 1.1283791, %v420_v45 }
 0x3a2   :  { %603 = vrcp.f32 %v432_v41  ;;  %v444_v48 = vand.u32 2147483648, %v432_v41  ;;  %v442_v51 = vand.u32 2147483647, %v432_v41  ;;  %vm438_vm6 = vweird.f32 %v432_v41 }
 0x3a3   :  { %v422_v54 = vmul.f32 %v421_v49, %v409_v23 }
 0x3a4   :  { %v445_v53 = vor.u32 1.1754944e-38, %v444_v48  ;;  %vm443_vm9 = vcmp.eq.f32.partialorder %v442_v51, 8.507059e+37 }
 0x3a8   :  { %v604_v44 = vpop.eup %603 }
 0x3a9   :  { %v434_v46 = vmul.f32 %v604_v44, %v432_v41  ;;  %vm439_vm5 = vweird.f32 %v604_v44 }
 0x3aa   :  { %vm440_vm7 = vmor %vm438_vm6, %vm439_vm5 }
 0x3ab   :  { %v435_v47 = vsub.f32 1.0, %v434_v46 }
 0x3ad   :  { %v436_v50 = vmul.f32 %v604_v44, %v435_v47 }
 0x3af   :  { %v437_v52 = vadd.f32 %v604_v44, %v436_v50 }
 0x3b1   :  { %v441_v55 = vsel %vm440_vm7, %v604_v44, %v437_v52 }
 0x3b2   :  { %v446_v56 = vsel %vm443_vm9, %v445_v53, %v441_v55 }
 0x3b3   :  { %v447_v57 = vmul.f32 %v446_v56, %v422_v54 }
 0x3b5   :  { %v576_v58 = vclamps-f32 %v447_v57, 1.0 }
 0x3b7   :  { %v450_v60 = vadd.f32 1.0, %v576_v58 }
 0x3b9   :  { %v451_v61 = vmul.f32 %v450_v60, %v408_v59 }
 0x3bb   :  { %v452_v62 = vadd.f32 %v712_v6, %v451_v61 }
 0x3bd   :  { %472 = vmatpush.msrb.mxu2 %v452_v62 }
 0x3be   :  { %577 = vmatmul.msk.f32.vlgmr.msrb.gmra.mxu2 %vm177_vm8, %v453_v63 }
 0x441   :  { %v474_v0 = vpop.f32.mrf.mxu2 }
 0x442   :  { %v478_v1 = vmul.f32 0.70710677, %v474_v0  ;;  %v477_v38 = vmul.f32 0.5, %v474_v0 }
 0x444   :  { %v479_v2 = vmul.f32 %v478_v1, %v478_v1 }
 0x446   :  { %v480_v3 = vmin.f32 %v479_v2, 16.0 }
 0x448   :  { %v481_v4 = vmul.f32 2.1237322e-06, %v480_v3  ;;  %v492_v5 = vmul.f32 3.8918573e-05, %v480_v3 }
 0x44a   :  { %v482_v7 = vadd.f32 0.00028619796, %v481_v4  ;;  %v493_v8 = vadd.f32 0.001143296, %v492_v5 }
 0x44c   :  { %v483_v9 = vmul.f32 %v482_v7, %v480_v3  ;;  %v494_v10 = vmul.f32 %v493_v8, %v480_v3 }
 0x44e   :  { %v495_v11 = vadd.f32 0.014752088, %v494_v10  ;;  %v484_v12 = vadd.f32 0.0036580483, %v483_v9 }
 0x450   :  { %v496_v13 = vmul.f32 %v495_v11, %v480_v3  ;;  %v485_v15 = vmul.f32 %v484_v12, %v480_v3 }
 0x452   :  { %v497_v14 = vadd.f32 0.112945676, %v496_v13  ;;  %v486_v18 = vadd.f32 0.05243302, %v485_v15 }
 0x454   :  { %v498_v16 = vmul.f32 %v497_v14, %v480_v3  ;;  %v487_v21 = vmul.f32 %v486_v18, %v480_v3 }
 0x456   :  { %v499_v17 = vadd.f32 0.4994258, %v498_v16  ;;  %v488_v22 = vadd.f32 0.18741608, %v487_v21 }
 0x458   :  { %v500_v19 = vmul.f32 %v499_v17, %v480_v3  ;;  %v489_v24 = vmul.f32 %v488_v22, %v480_v3 }
 0x45a   :  { %v501_v20 = vadd.f32 1.0, %v500_v19  ;;  %v490_v28 = vadd.f32 1.1283791, %v489_v24 }
 0x45c   :  { %605 = vrcp.f32 %v501_v20  ;;  %v513_v27 = vand.u32 2147483648, %v501_v20  ;;  %v511_v30 = vand.u32 2147483647, %v501_v20  ;;  %vm507_vm11 = vweird.f32 %v501_v20 }
 0x45d   :  { %v491_v33 = vmul.f32 %v490_v28, %v478_v1 }
 0x45e   :  { %v514_v32 = vor.u32 1.1754944e-38, %v513_v27  ;;  %vm512_vm13 = vcmp.eq.f32.partialorder %v511_v30, 8.507059e+37 }
 0x462   :  { %v606_v23 = vpop.eup %605 }
 0x463   :  { %v503_v25 = vmul.f32 %v606_v23, %v501_v20  ;;  %vm508_vm10 = vweird.f32 %v606_v23 }
 0x464   :  { %vm509_vm12 = vmor %vm507_vm11, %vm508_vm10 }
 0x465   :  { %v504_v26 = vsub.f32 1.0, %v503_v25 }
 0x467   :  { %v505_v29 = vmul.f32 %v606_v23, %v504_v26 }
 0x469   :  { %v506_v31 = vadd.f32 %v606_v23, %v505_v29 }
 0x46b   :  { %v510_v34 = vsel %vm509_vm12, %v606_v23, %v506_v31 }
 0x46c   :  { %v515_v35 = vsel %vm512_vm13, %v514_v32, %v510_v34 }
 0x46d   :  { %v516_v36 = vmul.f32 %v515_v35, %v491_v33 }
 0x46f   :  { %v578_v37 = vclamps-f32 %v516_v36, 1.0 }
 0x471   :  { %v519_v39 = vadd.f32 1.0, %v578_v37 }
 0x473   :  { %v520_v40 = vmul.f32 %v519_v39, %v477_v38 }
 0x475   :  { %v521_v41 = vadd.f32 %v712_v6, %v520_v40 }
 0x477   :  { %541 = vmatpush.msrb.mxu3 %v521_v41 }
 0x478   :  { %579 = vmatmul.msk.f32.vlgmr.msrb.gmra.mxu3 %vm177_vm8, %v522_v42 }
 0x4fb   :  { %v543_v43 = vpop.f32.mrf.mxu3 }
 0x4fc   :  { %546 = vst [vmem:[#allocation7] sm:$0x1] %v543_v43 }
 0x4fd   :  { %557 = dma.vmem_to_hbm [thread:$0]  %s553_s1, 16, %s555_s23, [#allocation4]  }
 0x4fe   :  { %683 = dma.done.wait [#allocation4], 16  }
 0x4ff   :  { %684 = vsyncadd [#allocation4], 4294967280 }
 0x500   :  { %562 = vsyncpa [#allocation3], 1 }
 0x501   :  { %563 = vsyncpa [#allocation6], 1 }
 0x502   :  { %564 = vsyncpa [#allocation4], 1 }

</bundles_post_ra>
